<compile_context>
chip_gen: v7x
topology: tpu7x:2x2x1
jax: 0.10.0
libtpu: 0.0.40
codegen_flags: <defaults>
</compile_context>

<pallas_src>
import jax
import jax.numpy as jnp
from jax import lax
from jax.experimental import pallas as pl
from jax.experimental.pallas import tpu as pltpu


# ---------------------------------------------------------------------------
# Pallas kernel (batch-on-lanes: state index on sublanes, batch on lanes)
# ---------------------------------------------------------------------------
def _stress_rate_kernel(yT_ref, ctl_ref, A_ref, p_ref, ratesT_ref):
    yT = yT_ref[...]                      # (S, bb)   state-major, batch on lanes
    ctl = ctl_ref[...]                    # (3, bb)   rows: [srate, stress, T]
    A = A_ref[...]                        # (S, S)
    p = p_ref[...]                        # (S, 3)    columns: [b_e, b_T, c0]

    S = yT.shape[0]

    srate = ctl[0:1, :]                   # (1, bb) controlled stress rate
    cs = ctl[1:2, :]                      # (1, bb) controlled stress value
    cT = ctl[2:3, :]                      # (1, bb) temperature

    be = p[:, 0:1]                        # (S, 1)
    bT = p[:, 1:2]                        # (S, 1)
    c0 = p[:, 2:3]                        # (S, 1)

    # state-index-0 (stress) row mask, broadcast over the lane (batch) dim
    row0 = lax.broadcasted_iota(jnp.int32, (S, 1), 0) == 0

    # y with y[..., 0] := stress_fn(t)
    ypT = jnp.where(row0, cs, yT)                                   # (S, bb)

    # single MXU matmul: base rate excluding the erate term (K=S, N=bb lane-dense)
    base = jnp.dot(A, ypT, preferred_element_type=jnp.float32)      # (S, bb)
    base = base + bT * cT + c0                                      # outer broadcasts

    # Closed-form Newton (model affine in erate -> exact after one step):
    #   R(erate) = base[0,:] + b_e[0]*erate - srate = 0
    inv_be0 = pl.reciprocal(p[0:1, 0:1])                            # (1, 1), exact
    erate = (srate - base[0:1, :]) * inv_be0                        # (1, bb)

    ydot = base + be * erate                                        # (S, bb)
    ydot = jnp.where(row0, erate, ydot)                             # ydot[0, :] = erate
    ratesT_ref[...] = ydot.astype(ratesT_ref.dtype)


# ---------------------------------------------------------------------------
# Interpolators (glue) and wrapper
# ---------------------------------------------------------------------------
def srate_fn(t):
    return 0.01 * jnp.sin(t) + 0.02


def stress_fn(t):
    return 0.5 * jnp.cos(t)


def T_fn(t):
    return 300.0 + 10.0 * t


def _choose_tiling(nbatch: int, max_bb: int = 8192):
    """Pick (bb, grid, padded_batch) for the lane (batch) dimension.

    Policy: avoid padding, use the fewest/fattest grid steps (~0.35us/step overhead),
    and give v7x an even grid >= 2 when the batch is big enough to split cleanly.
    Double-buffered per-step VMEM at bb=8192 is < 2 MiB, well under every generation's
    scoped limit, so VMEM never constrains bb here.
    """
    if nbatch <= max_bb:
        if nbatch >= 512 and nbatch % 256 == 0:
            return nbatch // 2, 2, nbatch          # two equal 128-aligned tiles, no pad
        return nbatch, 1, nbatch                   # single full-batch tile, no pad
    grid = (nbatch + max_bb - 1) // max_bb
    per = (nbatch + grid - 1) // grid
    bb = ((per + 127) // 128) * 128                # even out tiles, minimal tail pad
    return bb, grid, grid * bb


def stress_based_model(y, t, A, b_e, b_T, c0, *, max_bb=8192):
    nbatch, S = y.shape
    f32 = jnp.float32

    Af = A.astype(f32)
    be = b_e.astype(f32)
    bT = b_T.astype(f32)
    cc0 = c0.astype(f32)

    # ---- batch-invariant Jacobian, hoisted out of the kernel -------------
    #   J[0, :] = -A[0, :] / b_e[0];  J[:, 0] = 0   (identical for every batch element)
    J = Af.at[0, :].set(-Af[0, :] / be[0])
    J = J.at[:, 0].set(0.0)
    jacs = jnp.broadcast_to(J, (nbatch, S, S))     # lazy under jit; no kernel traffic

    # ---- per-batch scalar drives, batch-on-lanes --------------------------
    ctl = jnp.stack([srate_fn(t), stress_fn(t), T_fn(t)], axis=0).astype(f32)  # (3, nbatch)
    yT = y.astype(f32).T                                                       # (S, nbatch)
    params = jnp.stack([be, bT, cc0], axis=1)                                  # (S, 3)

    bb, grid_b, padded = _choose_tiling(nbatch, max_bb)
    if padded != nbatch:   # only for huge, non-divisible batches
        yT = jnp.pad(yT, ((0, 0), (0, padded - nbatch)))
        ctl = jnp.pad(ctl, ((0, 0), (0, padded - nbatch)))

    ratesT = pl.pallas_call(
        _stress_rate_kernel,
        out_shape=jax.ShapeDtypeStruct((S, padded), f32),
        grid_spec=pltpu.PrefetchScalarGridSpec(
            num_scalar_prefetch=0,
            grid=(grid_b,),
            in_specs=[
                pl.BlockSpec((S, bb), lambda i: (0, i)),   # y (state-major)
                pl.BlockSpec((3, bb), lambda i: (0, i)),   # drives [srate, stress, T]
                pl.BlockSpec((S, S), lambda i: (0, 0)),    # A (constant across grid)
                pl.BlockSpec((S, 3), lambda i: (0, 0)),    # [b_e, b_T, c0] columns
            ],
            out_specs=pl.BlockSpec((S, bb), lambda i: (0, i)),
        ),
        compiler_params=pltpu.CompilerParams(
            dimension_semantics=("parallel",)),
    )(yT, ctl, Af, params)

    rates = ratesT[:, :nbatch].T        # layout plumbing back to the module's (nbatch, S)
    return rates, jacs


# ---------------------------------------------------------------------------
# Pure-JAX reference (same semantics, for verification)
# ---------------------------------------------------------------------------
def reference(y, t, A, b_e, b_T, c0):
    csr, cs, cT = srate_fn(t), stress_fn(t), T_fn(t)
    yp = y.at[:, 0].set(cs)
    base = yp @ A.T + cT[:, None] * b_T + c0
    erate = (csr - base[:, 0]) / b_e[0]
    ydot = base + erate[:, None] * b_e
    ydot = ydot.at[:, 0].set(erate)
    J2 = A.at[0, :].set(-A[0, :] / b_e[0])
    J2 = J2.at[:, 0].set(0.0)
    jacs = jnp.broadcast_to(J2, (y.shape[0],) + A.shape)
    return ydot, jacs


if __name__ == "__main__":
    nbatch, nstate = 512, 8   # -> two 256-wide lane-aligned tiles, even grid, no padding

    key = jax.random.PRNGKey(0)
    kA, kbe, kbT, kc0, ky = jax.random.split(key, 5)

    # deterministic synthetic InelasticModel parameters
    A = 0.1 * jax.random.normal(kA, (nstate, nstate), jnp.float32)
    b_e = jax.random.normal(kbe, (nstate,), jnp.float32)
    b_e = b_e.at[0].set(2.0)  # Je[..., 0] must be well away from zero (module precondition)
    b_T = 0.01 * jax.random.normal(kbT, (nstate,), jnp.float32)
    c0 = 0.1 * jax.random.normal(kc0, (nstate,), jnp.float32)

    # example inputs
    y = jax.random.normal(ky, (nbatch, nstate), jnp.float32)
    t = jnp.linspace(0.0, 1.0, nbatch, dtype=jnp.float32)

    fwd = jax.jit(lambda y_, t_: stress_based_model(y_, t_, A, b_e, b_T, c0))
    rates, jacs = fwd(y, t)
    jax.block_until_ready((rates, jacs))

    rates_ref, jacs_ref = reference(y, t, A, b_e, b_T, c0)
    assert jnp.allclose(rates, rates_ref, rtol=1e-5, atol=1e-5), "rates mismatch"
    assert jnp.allclose(jacs, jacs_ref, rtol=1e-5, atol=1e-5), "jacs mismatch"

    print("KERNEL_OK")
</pallas_src>

<mosaic_0001>
module attributes {stable_mosaic.version = 11 : i64} {
  func.func @_stress_rate_kernel(%arg0: i32, %arg1: memref<8x256xf32, #tpu.memory_space<vmem>>, %arg2: memref<3x256xf32, #tpu.memory_space<vmem>>, %arg3: memref<8x8xf32, #tpu.memory_space<vmem>>, %arg4: memref<8x3xf32, #tpu.memory_space<vmem>>, %arg5: memref<8x256xf32, #tpu.memory_space<vmem>>) attributes {dimension_semantics = [#tpu.dimension_semantics<parallel>], iteration_bounds = array<i64: 2>, scalar_prefetch = 0 : i64, scratch_operands = 0 : i64, tpu.core_type = #tpu.core_type<tc>, window_params = [{transform_indices = @transform_0, window_bounds = array<i64: 8, 256>}, {transform_indices = @transform_1, window_bounds = array<i64: 3, 256>}, {pipeline_mode = #tpu.pipeline_mode<synchronous>, transform_indices = @transform_2, window_bounds = array<i64: 8, 8>}, {pipeline_mode = #tpu.pipeline_mode<synchronous>, transform_indices = @transform_3, window_bounds = array<i64: 8, 3>}, {transform_indices = @transform_4, window_bounds = array<i64: 8, 256>}]} {
    %c0 = arith.constant 0 : index
    %c0_0 = arith.constant 0 : index
    %0 = vector.load %arg1[%c0, %c0_0] : memref<8x256xf32, #tpu.memory_space<vmem>>, vector<8x256xf32>
    %c0_1 = arith.constant 0 : index
    %c0_2 = arith.constant 0 : index
    %1 = vector.load %arg2[%c0_1, %c0_2] : memref<3x256xf32, #tpu.memory_space<vmem>>, vector<3x256xf32>
    %c0_3 = arith.constant 0 : index
    %c0_4 = arith.constant 0 : index
    %2 = vector.load %arg3[%c0_3, %c0_4] : memref<8x8xf32, #tpu.memory_space<vmem>>, vector<8x8xf32>
    %c0_5 = arith.constant 0 : index
    %c0_6 = arith.constant 0 : index
    %3 = vector.load %arg4[%c0_5, %c0_6] : memref<8x3xf32, #tpu.memory_space<vmem>>, vector<8x3xf32>
    %4 = vector.extract_strided_slice %1 {offsets = [0, 0], sizes = [1, 256], strides = [1, 1]} : vector<3x256xf32> to vector<1x256xf32>
    %5 = vector.extract_strided_slice %1 {offsets = [1, 0], sizes = [1, 256], strides = [1, 1]} : vector<3x256xf32> to vector<1x256xf32>
    %6 = vector.extract_strided_slice %1 {offsets = [2, 0], sizes = [1, 256], strides = [1, 1]} : vector<3x256xf32> to vector<1x256xf32>
    %7 = vector.extract_strided_slice %3 {offsets = [0, 0], sizes = [8, 1], strides = [1, 1]} : vector<8x3xf32> to vector<8x1xf32>
    %8 = vector.extract_strided_slice %3 {offsets = [0, 1], sizes = [8, 1], strides = [1, 1]} : vector<8x3xf32> to vector<8x1xf32>
    %9 = vector.extract_strided_slice %3 {offsets = [0, 2], sizes = [8, 1], strides = [1, 1]} : vector<8x3xf32> to vector<8x1xf32>
    %10 = tpu.iota {dimensions = array<i32: 0>} : vector<8x1xi32>
    %c0_i32 = arith.constant 0 : i32
    %11 = vector.broadcast %c0_i32 : i32 to vector<8x1xi32>
    %12 = arith.cmpi eq, %10, %11 : vector<8x1xi32>
    %13 = vector.shape_cast %12 : vector<8x1xi1> to vector<8x1xi1>
    %14 = vector.broadcast %13 : vector<8x1xi1> to vector<8x256xi1>
    %15 = vector.shape_cast %5 : vector<1x256xf32> to vector<1x256xf32>
    %16 = vector.broadcast %15 : vector<1x256xf32> to vector<8x256xf32>
    %17 = arith.select %14, %16, %0 : vector<8x256xi1>, vector<8x256xf32>
    %cst = arith.constant dense<0.000000e+00> : vector<8x256xf32>
    %18 = tpu.matmul %2, %17, %cst {dimension_numbers = #tpu.dot_dimension_numbers<[1], [0], [0], [1], [0, 0, 1, 1], [], []>} : vector<8x8xf32>, vector<8x256xf32>, vector<8x256xf32> -> vector<8x256xf32>
    %19 = vector.broadcast %8 : vector<8x1xf32> to vector<8x256xf32>
    %20 = vector.broadcast %6 : vector<1x256xf32> to vector<8x256xf32>
    %21 = arith.mulf %19, %20 : vector<8x256xf32>
    %22 = arith.addf %18, %21 : vector<8x256xf32>
    %23 = vector.broadcast %9 : vector<8x1xf32> to vector<8x256xf32>
    %24 = arith.addf %22, %23 : vector<8x256xf32>
    %25 = vector.extract_strided_slice %3 {offsets = [0, 0], sizes = [1, 1], strides = [1, 1]} : vector<8x3xf32> to vector<1x1xf32>
    %26 = tpu.reciprocal %25 : vector<1x1xf32> -> vector<1x1xf32>
    %27 = vector.extract_strided_slice %24 {offsets = [0, 0], sizes = [1, 256], strides = [1, 1]} : vector<8x256xf32> to vector<1x256xf32>
    %28 = arith.subf %4, %27 : vector<1x256xf32>
    %29 = vector.broadcast %26 : vector<1x1xf32> to vector<1x256xf32>
    %30 = arith.mulf %28, %29 : vector<1x256xf32>
    %31 = vector.broadcast %7 : vector<8x1xf32> to vector<8x256xf32>
    %32 = vector.broadcast %30 : vector<1x256xf32> to vector<8x256xf32>
    %33 = arith.mulf %31, %32 : vector<8x256xf32>
    %34 = arith.addf %24, %33 : vector<8x256xf32>
    %35 = vector.shape_cast %12 : vector<8x1xi1> to vector<8x1xi1>
    %36 = vector.broadcast %35 : vector<8x1xi1> to vector<8x256xi1>
    %37 = vector.shape_cast %30 : vector<1x256xf32> to vector<1x256xf32>
    %38 = vector.broadcast %37 : vector<1x256xf32> to vector<8x256xf32>
    %39 = arith.select %36, %38, %34 : vector<8x256xi1>, vector<8x256xf32>
    %c0_7 = arith.constant 0 : index
    %c0_8 = arith.constant 0 : index
    %40 = vector.load %arg5[%c0_7, %c0_8] : memref<8x256xf32, #tpu.memory_space<vmem>>, vector<8x256xf32>
    tpu.vector_store %arg5[%c0_7, %c0_8], %39 {strides = array<i32>} : memref<8x256xf32, #tpu.memory_space<vmem>>, vector<8x256xf32>,
    return
  }
  func.func @transform_0(%arg0: i32) -> (i32, i32) {
    %c0_i32 = arith.constant 0 : i32
    %c0_i32_0 = arith.constant 0 : i32
    return %c0_i32, %arg0 : i32, i32
  }
  func.func @transform_1(%arg0: i32) -> (i32, i32) {
    %c0_i32 = arith.constant 0 : i32
    %c0_i32_0 = arith.constant 0 : i32
    return %c0_i32, %arg0 : i32, i32
  }
  func.func @transform_2(%arg0: i32) -> (i32, i32) {
    %c0_i32 = arith.constant 0 : i32
    %c0_i32_0 = arith.constant 0 : i32
    %c0_i32_1 = arith.constant 0 : i32
    return %c0_i32, %c0_i32_0 : i32, i32
  }
  func.func @transform_3(%arg0: i32) -> (i32, i32) {
    %c0_i32 = arith.constant 0 : i32
    %c0_i32_0 = arith.constant 0 : i32
    %c0_i32_1 = arith.constant 0 : i32
    return %c0_i32, %c0_i32_0 : i32, i32
  }
  func.func @transform_4(%arg0: i32) -> (i32, i32) {
    %c0_i32 = arith.constant 0 : i32
    %c0_i32_0 = arith.constant 0 : i32
    return %c0_i32, %arg0 : i32, i32
  }
}

</mosaic_0001>

<bundles_post_ra>
// kernel: _lambda_.1
= control target key start
LH: loop header
LB: loop body
LE: loop exit
PB: predicated region body
PF: predicated region fallthrough
CT: control target
= control target key end

     0   :  { %9 = vsyncpa [#allocation3], 0  ;;  %s781_s0 = inlined_call_operand.vmem [shape: f32[8,512], index: 0, kind: input, shape index: {}]   ;;  %s782_s1 = inlined_call_operand.vmem [shape: f32[3,512], index: 1, kind: input, shape index: {}]   ;;  %s783_s2 = inlined_call_operand.vmem [shape: f32[8,8], index: 2, kind: input, shape index: {}]   ;;  %s784_s3 = inlined_call_operand.vmem [shape: f32[8,3], index: 3, kind: input, shape index: {}]   ;;  %s785_s4 = inlined_call_operand.hbm [shape: f32[8,512], index: 4, kind: output, shape index: {}]  }
   0x1   :  { %11 = vsyncpa [#allocation3 + $0x1], 0  ;;  %s655_s15 = smov 0   ;;  %s657_s16 = smov 0  }
   0x2   :  { %s659_s17 = smov 0   ;;  %s661_s18 = smov 0  }
   0x3 LB: > { %s676_s19 = sadd.s32 4294967295, %s622_s18   ;;  %s494_s20 = sadd.s32 4294967294, %s622_s18   ;;  %s622_s18 = sphi %s661_s18, %s791_s18   ;;  %s618_s17 = sphi %s659_s17, %s790_s17   ;;  %s614_s16 = sphi %s657_s16, %s789_s16   ;;  %s610_s15 = sphi %s655_s15, %s788_s15  }
   0x4   : > { %s680_s21 = sadd.s32 1, %s622_s18   ;;  %s118_s22 = sadd.s32 1, %s618_s17 }
   0x5   : > { %s115_s23 = ssub.s32 %s622_s18, %s680_s21  ;;  %p128_p0 = scmp.ne.s32.totalorder %s618_s17, %s614_s16 }
   0x6   : > { %p116_p1 = scmp.eq.s32.totalorder %s115_s23, 0  ;;  %p129_p2 = scmp.eq.s32.totalorder %s676_s19, 1 }
   0x7   : > { %p134_p3 = scmp.ne.s32.totalorder %s614_s16, %s610_s15  ;;  %p135_p4 = scmp.eq.s32.totalorder %s494_s20, 1 }
   0x8   : > { %s691_s24 = scalar_select %p116_p1, %s618_s17, %s118_s22  }
   0x9   : > { %p693_p5 = por %p129_p2, %p128_p0  ;;  %p697_p6 = por %p135_p4, %p134_p3 }
   0xa   : > { %p497_p7 = scmp.ge.s32.totalorder %s622_s18, 1  ;;  %p177_p8 = scmp.lt.s32.totalorder %s622_s18, 3 }
   0xc   : > { %p178_p9 = pnand %p497_p7, %p177_p8 }
   0xd   : > { %s499_s27 = sshll.u32 (!%p178_p9), %s676_s19, 1  ;;  %v226_v0 = vlaneseq (!%p178_p9)  ;;  %v225_v1 = vld [vmem:[%s784_s3] sm:$0xff] (!%p178_p9)  ;;  %v624_v2 = vmov (!%p178_p9), 0.0   ;;  %v625_v3 = vmov (!%p178_p9), 1   ;;  %v626_v5 = vmov (!%p178_p9), 0   ;;  %s205_s14 = sand.u32 (!%p178_p9), 1, %s614_s16  }
   0xe   : > { %181 = sbr.rel (%p178_p9) target bundleno = 278 (0x116), region = 36  ;;  %p209_p10 = scmp.lt.s32.totalorder (!%p178_p9), %s499_s27, 3  ;;  %345 = vmatprep.mubr.f32.mxu0 (!%p178_p9), %v624_v2  ;;  %554 = vset.pattern.permute.xlu0 (!%p178_p9), %v625_v3  ;;  %558 = vrcp.f32 (!%p178_p9), %v225_v1  ;;  %v627_v8 = vmov (!%p178_p9), 2   ;;  %v224_v19 = vld [vmem:[%s783_s2] sm:$0xff] (!%p178_p9)  ;;  %vm277_vm1 = vcmask (!%p178_p9), 64512  }
   0xf   : > { %v707_v4 = vshrl.u32 (!%p178_p9), %v226_v0, 7  ;;  %254 = vperm.xlu0 (!%p178_p9), %554, %v225_v1   ;;  %556 = vset.pattern.permute.xlu1 (!%p178_p9), %v626_v5  ;;  %v628_v27 = vmov (!%p178_p9), 839922192   ;;  %s498_s20 = sshll.u32 (!%p178_p9), %s205_s14, 4  ;;  %s509_s22 = sshll.u32 (!%p178_p9), %s676_s19, 8 }
  0x10   : > { %v369_v28 = vunpack.c.l.s4 (!%p178_p9), %v628_v27  ;;  %s207_s23 = scalar_lea.vmem (!%p178_p9), [#allocation2], %s498_s20  ;;  %s409_s19 = scalar_lea.sflag (!%p178_p9), [#allocation3], %s205_s14 }
  0x11   : > { %v234_v6 = vsub.s32 (!%p178_p9), 1, %v707_v4  ;;  %v238_v7 = vsub.s32 (!%p178_p9), 5, %v707_v4  ;;  %vm228_vm0 = vcmp.eq.s32.totalorder (!%p178_p9), %v707_v4, 0  ;;  %v259_v20 = vsub.s32 (!%p178_p9), 2, %v707_v4  ;;  %s629_s6 = smov (!%p178_p9), [#allocation2]  }
  0x12   : > { %v263_v21 = vsub.s32 (!%p178_p9), 6, %v707_v4  ;;  %v370_v31 = vunpack.c.0.s8 (!%p178_p9), %v369_v28  ;;  %v384_v44 = vsub.s32 (!%p178_p9), 0, %v707_v4  ;;  %v388_v45 = vsub.s32 (!%p178_p9), 4, %v707_v4  ;;  %s564_s7 = sshll.u32 (!%p178_p9), %s629_s6, 4  ;;  %s565_s7 = int_to_ptr.vmem [resolvable:$false] %s564_s7 }
  0x13   : > { %555 = vset.pattern.permute.xlu0 (!%p178_p9), %v627_v8 }
  0x14   : > { %353 = vperm.xlu0 (!%p178_p9), %555, %v225_v1   ;;  %v373_v37 = vsub.s32 (!%p178_p9), %v370_v31, %v707_v4 }
  0x15   : > { %s793_s27 = smov (!%p209_p10, %s499_s27), 3 }
  0x16   : > { %s500_s30 = sshll.u32 %s793_s27, 3  ;;  %s502_s5 = sshll.u32 %s793_s27, 2 }
  0x17   : > { %s212_s8 = scalar_lea.vmem %s781_s0, %s500_s30  ;;  %s218_s11 = scalar_lea.vmem %s782_s1, %s502_s5 }
  0x18   : > { %v223_v9 = vld [vmem:[%s218_s11] sm:$0x77]  ;;  %v222_v12 = vld [vmem:[%s212_s8 + $0x8] sm:$0xff]  ;;  %v559_v16 = vpop.eup %558  ;;  %557 = vset.pattern.permute.xlu0 %v626_v5  ;;  %s423_s27 = sshll.u32 %s207_s23, 4  ;;  %s735_s30 = scalar_lea.hbm %s785_s4, %s509_s22  ;;  %s737_s27 = int_to_ptr.vmem [resolvable:$true] %s423_s27 }
  0x19   : > { %v239_v10 = vrot.slane %v223_v9, %v238_v7  ;;  %v235_v11 = vrot.slane %v223_v9, %v234_v6  ;;  %v221_v13 = vld [vmem:[%s212_s8] sm:$0xff]  ;;  %366 = vperm.xlu1 %556, %v559_v16   ;;  %v260_v22 = vrot.slane %v223_v9, %v259_v20  ;;  %v264_v23 = vrot.slane %v223_v9, %v263_v21  ;;  %s560_s5 = scalar_lea.vmem %s737_s27, 256  ;;  %s566_s8 = scalar_lea.vmem %s565_s7, 512 }
  0x1a   : > { %p561_p11 = scmp.ne.s32.totalorder %s737_s27, %s560_s5  ;;  %p567_p0 = scmp.lt.s32.totalorder %s737_s27, %s565_s7 }
  0x1b   : > { %v249_v14 = vrot.slane %v239_v10, %v234_v6  ;;  %v245_v15 = vrot.slane %v235_v11, %v234_v6  ;;  %v270_v24 = vrot.slane %v260_v22, %v259_v20  ;;  %v274_v26 = vrot.slane %v264_v23, %v259_v20  ;;  %p568_p1 = scmp.lt.s32.totalorder %s566_s8, %s560_s5 }
  0x1c   : > { %p562_p12 = pnand %p561_p11, %p693_p5 }
  0x1d   : > { %v251_v17 = vsel %vm228_vm0, %v249_v14, %v222_v12  ;;  %v250_v18 = vsel %vm228_vm0, %v245_v15, %v221_v13  ;;  %378 = vperm.xlu1 %556, %v225_v1   ;;  %p569_p2 = por %p568_p1, %p567_p0 }
  0x1e   : > { %281 = vmatprep.subr.mxu0 %v251_v17  ;;  %p563_p13 = pneg %p562_p12 }
  0x1f   : > { %282 = vmatpush1.msra.mxu0 %v250_v18 }
  0x20   : > { %503 = vmatmul.mubr.msk.f32.vlgmr.msra.gmra.mrb[0].mxu0 %vm277_vm1, %v224_v19  ;;  %p570_p3 = pnand %p569_p2, %p563_p13 }
  0x8e   : > { %v255_v25 = vpop.permute.xlu0 %254 }
  0x8f   : > { %v275_v29 = vmul.f32 %v270_v24, %v255_v25  ;;  %v276_v30 = vmul.f32 %v274_v26, %v255_v25 }
  0x93   : > { %v354_v33 = vpop.permute.xlu0 %353 }
  0x98   : > { %v367_v40 = vpop.permute.xlu1 %366 }
  0x99   : > { %v374_v42 = vrot.slane %v367_v40, %v373_v37 }
  0x9c   : > { %v379_v51 = vpop.permute.xlu1 %378 }
  0xf3   : > { %v347_v32 = vpop.f32.mrb[0].mxu0 }
  0xf4   : > { %v348_v34 = vadd.f32 %v347_v32, %v275_v29  ;;  %v349_v35 = vpop.f32.mrb[1].mxu0 }
  0xf5   : > { %v350_v36 = vadd.f32 %v349_v35, %v276_v30 }
  0xf6   : > { %v356_v38 = vadd.f32 %v354_v33, %v348_v34 }
  0xf7   : > { %v357_v39 = vadd.f32 %v354_v33, %v350_v36 }
  0xf9   : > { %v361_v41 = vcombine.low %v356_v38, %v357_v39 }
  0xfb   : > { %v363_v43 = vsub.f32 %v223_v9, %v361_v41 }
  0xfd   : > { %v376_v46 = vmul.f32 %v374_v42, %v363_v43 }
  0xff   : > { %v385_v47 = vrot.slane %v376_v46, %v384_v44  ;;  %v389_v48 = vrot.slane %v376_v46, %v388_v45 }
 0x101   : > { %v395_v49 = vrot.slane %v385_v47, %v384_v44  ;;  %v399_v50 = vrot.slane %v389_v48, %v384_v44 }
 0x103   : > { %v400_v52 = vmul.f32 %v395_v49, %v379_v51  ;;  %v401_v53 = vmul.f32 %v399_v50, %v379_v51 }
 0x105   : > { %v402_v54 = vadd.f32 %v400_v52, %v356_v38  ;;  %v403_v55 = vadd.f32 %v401_v53, %v357_v39 }
 0x107   : > { %v404_v56 = vsel %vm228_vm0, %v395_v49, %v402_v54  ;;  %v405_v57 = vsel %vm228_vm0, %v399_v50, %v403_v55 }
 0x108   : > { %406 = vst [vmem:[%s207_s23] sm:$0xff] %v404_v56  ;;  %407 = vst [vmem:[%s207_s23 + $0x8] sm:$0xff] %v405_v57 }
 0x109   : > { %573 = shalt.err (!%p570_p3)
}
 0x10a   : > { %s574_s9 = scalar_lea.hbm %s735_s30, 256  ;;  %s578_s12 = scalar_lea.hbm %s785_s4, 512 }
 0x10b   : > { %p575_p4 = scmp.ne.s32.totalorder %s735_s30, %s574_s9  ;;  %p579_p9 = scmp.lt.u32.totalorder %s735_s30, %s785_s4 }
 0x10c   : > { %p580_p10 = scmp.lt.u32.totalorder %s578_s12, %s574_s9  ;;  %p582_p12 = scmp.lt.u32.totalorder %s574_s9, %s735_s30 }
 0x10d   : > { %p576_p7 = pnand %p575_p4, %p693_p5 }
 0x10e   : > { %p581_p11 = por %p580_p10, %p579_p9 }
 0x10f   : > { %p577_p8 = pneg %p576_p7 }
 0x110   : > { %p583_p13 = por %p582_p12, %p581_p11 }
 0x112   : > { %p584_p0 = pnand %p583_p13, %p577_p8 }
 0x114   : > { %587 = shalt.err (!%p584_p0)
}
 0x115   : > { %510 = dma.vmem_to_hbm [thread:$0]  (%p693_p5), %s737_s27, 256, %s735_s30, %s409_s19  }
 0x116 PF: > { %p516_p1 = scmp.ge.s32.totalorder %s622_s18, 2  ;;  %s435_s20 = sand.u32 1, %s610_s15  }
 0x117   : > { %s436_s22 = scalar_lea.sflag [#allocation3], %s435_s20 }
 0x118   : > { %p513_p2 = pnand %p516_p1, %p697_p6 }
 0x11a   : > { %605 = dma.done.wait (!%p513_p2), %s436_s22, 256  }
 0x11b   : > { %607 = vsyncadd (!%p513_p2), %s436_s22, 4294967040  ;;  %p14_p3 = scmp.ge.s32.totalorder %s680_s21, 4   ;;  %s788_s15 = smov %s614_s16 }
 0x11c   : > { %s789_s16 = smov %s618_s17  ;;  %s790_s17 = smov %s691_s24 }
 0x11d   : > { %s791_s18 = smov %s680_s21  ;;  %16 = sbr.rel (!%p14_p3) target bundleno = 3 (0x3), region = 74 }
 0x124   :  { %441 = vsyncpa [#allocation3], 1 }
 0x125   :  { %443 = vsyncpa [#allocation3 + $0x1], 1 }

</bundles_post_ra>
